<compile_context>
chip_gen: v7x
topology: tpu7x:2x2x1
jax: 0.10.0
libtpu: 0.0.40
codegen_flags: <defaults>
</compile_context>

<pallas_src>
import jax
import jax.numpy as jnp
from jax.experimental import pallas as pl
from jax.experimental.pallas import tpu as pltpu

DEPTH = 4
NHIDDEN = 16


def _silu(z):
    # z * sigmoid(z); the reciprocal runs on the EUP slot (approx), freeing the VPU.
    return z * pl.reciprocal(1.0 + jnp.exp(-z), approx=True)


def aux_model_kernel(a_ref, x_ref,
                     ws0, bs0, ws1, bs1, ws2, bs2, ws3, bs3,
                     w1t, b1, w2t, b2, w3t, b3,
                     o_ref):
    """One graph per grid step, channel-major: features (C, N), nodes on the lane axis.

    a_ref : (1, N, N)   bf16  A_T[src, dst] = multiplicity of edge src->dst
    x_ref : (1, Cpad, N) f32  input features (channels padded to a sublane multiple)
    ws*   : (nh, 2*dim) bf16  fused [lin_l | lin_r] SAGE weight, pre-transposed
    bs*   : (nh, 1)     f32   lin_l bias column (broadcasts over the node/lane axis)
    w*t   : (out, in)   bf16  MLP weights, pre-transposed;  b* : (out, 1) f32
    o_ref : (1, 1, N)   f32   lane-dense output
    """
    A = a_ref[0]                      # (N, N) bf16
    h = x_ref[0]                      # (Cpad, N) f32

    for ws, bs in ((ws0, bs0), (ws1, bs1), (ws2, bs2), (ws3, bs3)):
        # sum aggregation over in-neighbours: agg[c, i] = sum_{j -> i} h[c, j]
        agg = jnp.dot(h.astype(jnp.bfloat16), A, preferred_element_type=jnp.float32)
        # fused SAGEConv: lin_l(agg) + lin_r(h) == Ws^T @ [agg ; h]  (single MXU push)
        cat = jnp.concatenate([agg, h], axis=0).astype(jnp.bfloat16)      # (2*dim, N)
        z = jnp.dot(ws[...], cat, preferred_element_type=jnp.float32) + bs[...]
        h = _silu(z)                  # (nh, N) f32

    # MLP head [nh -> 2nh -> 2nh -> 1], all channel-major so the final store is lane-dense.
    z = _silu(jnp.dot(w1t[...], h.astype(jnp.bfloat16),
                      preferred_element_type=jnp.float32) + b1[...])
    z = _silu(jnp.dot(w2t[...], z.astype(jnp.bfloat16),
                      preferred_element_type=jnp.float32) + b2[...])
    z = jnp.dot(w3t[...], z.astype(jnp.bfloat16),
                preferred_element_type=jnp.float32) + b3[...]              # (1, N)
    o_ref[0] = z


def aux_model_forward(x, edge_index, params):
    """x: (B, N, D_in) f32; edge_index: (B, 2, E) int32; returns (B, N, 1) f32."""
    B, N, D_in = x.shape

    # Dense adjacency per graph, stored transposed as A_T[src, dst] so channel-major
    # aggregation is a single h @ A_T matmul.  Small integer counts are exact in bf16.
    def build_adj_t(eg):
        src, dst = eg[0], eg[1]
        return jnp.zeros((N, N), jnp.float32).at[src, dst].add(1.0)

    adj_t = jax.vmap(build_adj_t)(edge_index).astype(jnp.bfloat16)         # (B, N, N)

    # Channel-major activations; pad the input channel axis to a sublane multiple so the
    # in-kernel [agg ; h] concat stays tile-aligned.
    d_pad = max(8, ((D_in + 7) // 8) * 8)
    x_cm = jnp.swapaxes(x, 1, 2)                                           # (B, D_in, N)
    x_cm = jnp.pad(x_cm, ((0, 0), (0, d_pad - D_in), (0, 0)))              # (B, d_pad, N)

    flat_inputs = [adj_t, x_cm]
    in_specs = [
        pl.BlockSpec((1, N, N), lambda b: (b, 0, 0)),
        pl.BlockSpec((1, d_pad, N), lambda b: (b, 0, 0)),
    ]

    def add_weight(w):
        flat_inputs.append(w)
        # Constant block index across grid steps -> stays resident, no re-DMA per graph.
        in_specs.append(pl.BlockSpec(w.shape, lambda b: (0, 0)))

    # SAGE layers: fuse lin_l / lin_r into one pre-transposed bf16 weight per layer.
    for i in range(DEPTH):
        wl, wr = params[f"wl{i}"], params[f"wr{i}"]
        din = wl.shape[0]
        dp = max(8, ((din + 7) // 8) * 8)
        if dp != din:
            wl = jnp.pad(wl, ((0, dp - din), (0, 0)))
            wr = jnp.pad(wr, ((0, dp - din), (0, 0)))
        add_weight(jnp.concatenate([wl, wr], axis=0).T.astype(jnp.bfloat16))  # (nh, 2*dp)
        add_weight(params[f"bl{i}"].reshape(-1, 1))                            # (nh, 1) f32

    # MLP head: pre-transpose weights to (out, in) bf16; biases as f32 columns.
    for wn, bn in (("w1", "b1"), ("w2", "b2"), ("w3", "b3")):
        add_weight(params[wn].T.astype(jnp.bfloat16))
        add_weight(params[bn].reshape(-1, 1))

    out_cm = pl.pallas_call(
        aux_model_kernel,
        out_shape=jax.ShapeDtypeStruct((B, 1, N), jnp.float32),
        grid=(B,),
        in_specs=in_specs,
        out_specs=pl.BlockSpec((1, 1, N), lambda b: (b, 0, 0)),
        compiler_params=pltpu.CompilerParams(
            dimension_semantics=("parallel",),      # graphs are independent -> megacore
            vmem_limit_bytes=32 * 1024 * 1024),
    )(*flat_inputs)
    return jnp.swapaxes(out_cm, 1, 2)               # (B, N, 1)


def make_params(key, dim_in, nhidden=NHIDDEN, depth=DEPTH):
    """Deterministic synthetic init.  Weights stored as (in, out); biases as (1, out)."""
    params = {}
    dim = dim_in
    keys = jax.random.split(key, depth * 3 + 6)
    ki = 0

    def nxt():
        nonlocal ki
        k = keys[ki]
        ki += 1
        return k

    for i in range(depth):
        params[f"wl{i}"] = 0.1 * jax.random.normal(nxt(), (dim, nhidden), jnp.float32)
        params[f"wr{i}"] = 0.1 * jax.random.normal(nxt(), (dim, nhidden), jnp.float32)
        params[f"bl{i}"] = 0.1 * jax.random.normal(nxt(), (1, nhidden), jnp.float32)
        dim = nhidden
    params["w1"] = 0.1 * jax.random.normal(nxt(), (dim, 2 * dim), jnp.float32)
    params["b1"] = 0.1 * jax.random.normal(nxt(), (1, 2 * dim), jnp.float32)
    params["w2"] = 0.1 * jax.random.normal(nxt(), (2 * dim, 2 * dim), jnp.float32)
    params["b2"] = 0.1 * jax.random.normal(nxt(), (1, 2 * dim), jnp.float32)
    params["w3"] = 0.1 * jax.random.normal(nxt(), (2 * dim, 1), jnp.float32)
    params["b3"] = 0.1 * jax.random.normal(nxt(), (1, 1), jnp.float32)
    return params


def _bdot(a, b):
    return jnp.dot(a.astype(jnp.bfloat16), b.astype(jnp.bfloat16),
                   preferred_element_type=jnp.float32)


def aux_model_reference_matched(x, edge_index, params, depth=DEPTH):
    """Pure-JAX reference mirroring the kernel's matmul precision (bf16 in, f32 acc)."""
    n = x.shape[1]

    def one(xg, eg):
        src, dst = eg[0], eg[1]
        adj = jnp.zeros((n, n), jnp.float32).at[dst, src].add(1.0)
        h = xg
        for i in range(depth):
            agg = _bdot(adj, h)
            z = _bdot(agg, params[f"wl{i}"]) + params[f"bl{i}"] + _bdot(h, params[f"wr{i}"])
            h = jax.nn.silu(z)
        z = jax.nn.silu(_bdot(h, params["w1"]) + params["b1"])
        z = jax.nn.silu(_bdot(z, params["w2"]) + params["b2"])
        return _bdot(z, params["w3"]) + params["b3"]

    return jax.vmap(one)(x, edge_index)


def aux_model_reference_f32(x, edge_index, params, depth=DEPTH):
    """Full-f32 reference matching PyG SAGEConv(aggr='sum') + MLP semantics."""
    hi = jax.lax.Precision.HIGHEST
    n = x.shape[1]

    def one(xg, eg):
        src, dst = eg[0], eg[1]
        adj = jnp.zeros((n, n), jnp.float32).at[dst, src].add(1.0)
        h = xg
        for i in range(depth):
            agg = jnp.dot(adj, h, precision=hi)
            z = (jnp.dot(agg, params[f"wl{i}"], precision=hi) + params[f"bl{i}"]
                 + jnp.dot(h, params[f"wr{i}"], precision=hi))
            h = jax.nn.silu(z)
        z = jax.nn.silu(jnp.dot(h, params["w1"], precision=hi) + params["b1"])
        z = jax.nn.silu(jnp.dot(z, params["w2"], precision=hi) + params["b2"])
        return jnp.dot(z, params["w3"], precision=hi) + params["b3"]

    return jax.vmap(one)(x, edge_index)


if __name__ == "__main__":
    B, N, D_IN, E = 8, 64, 4, 256   # batch of graphs, nodes, in-features, edges per graph

    key = jax.random.PRNGKey(0)
    kx, ks, kd, kp = jax.random.split(key, 4)

    x = jax.random.normal(kx, (B, N, D_IN), jnp.float32)
    edge_index = jnp.stack(
        [jax.random.randint(ks, (B, E), 0, N, dtype=jnp.int32),
         jax.random.randint(kd, (B, E), 0, N, dtype=jnp.int32)], axis=1)   # (B, 2, E)

    params = make_params(kp, D_IN)

    out = jax.block_until_ready(aux_model_forward(x, edge_index, params))
    assert out.shape == (B, N, 1), out.shape

    ref_m = aux_model_reference_matched(x, edge_index, params)
    ref_f = aux_model_reference_f32(x, edge_index, params)
    scale = float(jnp.max(jnp.abs(ref_f)))
    err_m = float(jnp.max(jnp.abs(out - ref_m)))
    err_f = float(jnp.max(jnp.abs(out - ref_f)))
    # bf16 MXU operands (f32 accumulate) + approx EUP reciprocal => relaxed tolerances.
    assert err_m <= 2e-3 + 2e-2 * scale, (err_m, scale)
    assert err_f <= 3e-3 + 5e-2 * scale, (err_f, scale)

    print("KERNEL_OK")
</pallas_src>

<mosaic_0001>
module attributes {stable_mosaic.version = 11 : i64} {
  func.func @aux_model_kernel(%arg0: i32, %arg1: memref<1x64x64xbf16, #tpu.memory_space<vmem>>, %arg2: memref<1x8x64xf32, #tpu.memory_space<vmem>>, %arg3: memref<16x16xbf16, #tpu.memory_space<vmem>>, %arg4: memref<16x1xf32, #tpu.memory_space<vmem>>, %arg5: memref<16x32xbf16, #tpu.memory_space<vmem>>, %arg6: memref<16x1xf32, #tpu.memory_space<vmem>>, %arg7: memref<16x32xbf16, #tpu.memory_space<vmem>>, %arg8: memref<16x1xf32, #tpu.memory_space<vmem>>, %arg9: memref<16x32xbf16, #tpu.memory_space<vmem>>, %arg10: memref<16x1xf32, #tpu.memory_space<vmem>>, %arg11: memref<32x16xbf16, #tpu.memory_space<vmem>>, %arg12: memref<32x1xf32, #tpu.memory_space<vmem>>, %arg13: memref<32x32xbf16, #tpu.memory_space<vmem>>, %arg14: memref<32x1xf32, #tpu.memory_space<vmem>>, %arg15: memref<1x32xbf16, #tpu.memory_space<vmem>>, %arg16: memref<1x1xf32, #tpu.memory_space<vmem>>, %arg17: memref<1x1x64xf32, #tpu.memory_space<vmem>>) attributes {dimension_semantics = [#tpu.dimension_semantics<parallel>], iteration_bounds = array<i64: 8>, scalar_prefetch = 0 : i64, scratch_operands = 0 : i64, tpu.core_type = #tpu.core_type<tc>, window_params = [{transform_indices = @transform_0, window_bounds = array<i64: 1, 64, 64>}, {transform_indices = @transform_1, window_bounds = array<i64: 1, 8, 64>}, {pipeline_mode = #tpu.pipeline_mode<synchronous>, transform_indices = @transform_2, window_bounds = array<i64: 16, 16>}, {pipeline_mode = #tpu.pipeline_mode<synchronous>, transform_indices = @transform_3, window_bounds = array<i64: 16, 1>}, {pipeline_mode = #tpu.pipeline_mode<synchronous>, transform_indices = @transform_4, window_bounds = array<i64: 16, 32>}, {pipeline_mode = #tpu.pipeline_mode<synchronous>, transform_indices = @transform_5, window_bounds = array<i64: 16, 1>}, {pipeline_mode = #tpu.pipeline_mode<synchronous>, transform_indices = @transform_6, window_bounds = array<i64: 16, 32>}, {pipeline_mode = #tpu.pipeline_mode<synchronous>, transform_indices = @transform_7, window_bounds = array<i64: 16, 1>}, {pipeline_mode = #tpu.pipeline_mode<synchronous>, transform_indices = @transform_8, window_bounds = array<i64: 16, 32>}, {pipeline_mode = #tpu.pipeline_mode<synchronous>, transform_indices = @transform_9, window_bounds = array<i64: 16, 1>}, {pipeline_mode = #tpu.pipeline_mode<synchronous>, transform_indices = @transform_10, window_bounds = array<i64: 32, 16>}, {pipeline_mode = #tpu.pipeline_mode<synchronous>, transform_indices = @transform_11, window_bounds = array<i64: 32, 1>}, {pipeline_mode = #tpu.pipeline_mode<synchronous>, transform_indices = @transform_12, window_bounds = array<i64: 32, 32>}, {pipeline_mode = #tpu.pipeline_mode<synchronous>, transform_indices = @transform_13, window_bounds = array<i64: 32, 1>}, {pipeline_mode = #tpu.pipeline_mode<synchronous>, transform_indices = @transform_14, window_bounds = array<i64: 1, 32>}, {pipeline_mode = #tpu.pipeline_mode<synchronous>, transform_indices = @transform_15, window_bounds = array<i64: 1, 1>}, {transform_indices = @transform_16, window_bounds = array<i64: 1, 1, 64>}]} {
    %c0 = arith.constant 0 : index
    %c0_0 = arith.constant 0 : index
    %c0_1 = arith.constant 0 : index
    %0 = vector.load %arg1[%c0, %c0_0, %c0_1] : memref<1x64x64xbf16, #tpu.memory_space<vmem>>, vector<1x64x64xbf16>
    %1 = vector.shape_cast %0 : vector<1x64x64xbf16> to vector<64x64xbf16>
    %c0_2 = arith.constant 0 : index
    %c0_3 = arith.constant 0 : index
    %c0_4 = arith.constant 0 : index
    %2 = vector.load %arg2[%c0_2, %c0_3, %c0_4] : memref<1x8x64xf32, #tpu.memory_space<vmem>>, vector<1x8x64xf32>
    %3 = vector.shape_cast %2 : vector<1x8x64xf32> to vector<8x64xf32>
    %4 = arith.truncf %3 : vector<8x64xf32> to vector<8x64xbf16>
    %cst = arith.constant dense<0.000000e+00> : vector<8x64xf32>
    %5 = tpu.matmul %4, %1, %cst {dimension_numbers = #tpu.dot_dimension_numbers<[1], [0], [0], [1], [0, 0, 1, 1], [], []>} : vector<8x64xbf16>, vector<64x64xbf16>, vector<8x64xf32> -> vector<8x64xf32>
    %6 = tpu.concatenate %5, %3 in 0 : vector<8x64xf32>, vector<8x64xf32> -> vector<16x64xf32>
    %7 = arith.truncf %6 : vector<16x64xf32> to vector<16x64xbf16>
    %c0_5 = arith.constant 0 : index
    %c0_6 = arith.constant 0 : index
    %8 = vector.load %arg3[%c0_5, %c0_6] : memref<16x16xbf16, #tpu.memory_space<vmem>>, vector<16x16xbf16>
    %cst_7 = arith.constant dense<0.000000e+00> : vector<16x64xf32>
    %9 = tpu.matmul %8, %7, %cst_7 {dimension_numbers = #tpu.dot_dimension_numbers<[1], [0], [0], [1], [0, 0, 1, 1], [], []>} : vector<16x16xbf16>, vector<16x64xbf16>, vector<16x64xf32> -> vector<16x64xf32>
    %c0_8 = arith.constant 0 : index
    %c0_9 = arith.constant 0 : index
    %10 = vector.load %arg4[%c0_8, %c0_9] : memref<16x1xf32, #tpu.memory_space<vmem>>, vector<16x1xf32>
    %11 = vector.broadcast %10 : vector<16x1xf32> to vector<16x64xf32>
    %12 = arith.addf %9, %11 : vector<16x64xf32>
    %cst_10 = arith.constant 0.000000e+00 : f32
    %13 = vector.broadcast %cst_10 : f32 to vector<16x64xf32>
    %14 = arith.subf %13, %12 : vector<16x64xf32>
    %15 = math.exp %14 : vector<16x64xf32>
    %cst_11 = arith.constant 1.000000e+00 : f32
    %16 = vector.broadcast %cst_11 : f32 to vector<16x64xf32>
    %17 = arith.addf %16, %15 : vector<16x64xf32>
    %18 = tpu.reciprocal %17 {approx = true} : vector<16x64xf32> -> vector<16x64xf32>
    %19 = arith.mulf %12, %18 : vector<16x64xf32>
    %20 = arith.truncf %19 : vector<16x64xf32> to vector<16x64xbf16>
    %cst_12 = arith.constant dense<0.000000e+00> : vector<16x64xf32>
    %21 = tpu.matmul %20, %1, %cst_12 {dimension_numbers = #tpu.dot_dimension_numbers<[1], [0], [0], [1], [0, 0, 1, 1], [], []>} : vector<16x64xbf16>, vector<64x64xbf16>, vector<16x64xf32> -> vector<16x64xf32>
    %22 = tpu.concatenate %21, %19 in 0 : vector<16x64xf32>, vector<16x64xf32> -> vector<32x64xf32>
    %23 = arith.truncf %22 : vector<32x64xf32> to vector<32x64xbf16>
    %c0_13 = arith.constant 0 : index
    %c0_14 = arith.constant 0 : index
    %24 = vector.load %arg5[%c0_13, %c0_14] : memref<16x32xbf16, #tpu.memory_space<vmem>>, vector<16x32xbf16>
    %cst_15 = arith.constant dense<0.000000e+00> : vector<16x64xf32>
    %25 = tpu.matmul %24, %23, %cst_15 {dimension_numbers = #tpu.dot_dimension_numbers<[1], [0], [0], [1], [0, 0, 1, 1], [], []>} : vector<16x32xbf16>, vector<32x64xbf16>, vector<16x64xf32> -> vector<16x64xf32>
    %c0_16 = arith.constant 0 : index
    %c0_17 = arith.constant 0 : index
    %26 = vector.load %arg6[%c0_16, %c0_17] : memref<16x1xf32, #tpu.memory_space<vmem>>, vector<16x1xf32>
    %27 = vector.broadcast %26 : vector<16x1xf32> to vector<16x64xf32>
    %28 = arith.addf %25, %27 : vector<16x64xf32>
    %cst_18 = arith.constant 0.000000e+00 : f32
    %29 = vector.broadcast %cst_18 : f32 to vector<16x64xf32>
    %30 = arith.subf %29, %28 : vector<16x64xf32>
    %31 = math.exp %30 : vector<16x64xf32>
    %cst_19 = arith.constant 1.000000e+00 : f32
    %32 = vector.broadcast %cst_19 : f32 to vector<16x64xf32>
    %33 = arith.addf %32, %31 : vector<16x64xf32>
    %34 = tpu.reciprocal %33 {approx = true} : vector<16x64xf32> -> vector<16x64xf32>
    %35 = arith.mulf %28, %34 : vector<16x64xf32>
    %36 = arith.truncf %35 : vector<16x64xf32> to vector<16x64xbf16>
    %cst_20 = arith.constant dense<0.000000e+00> : vector<16x64xf32>
    %37 = tpu.matmul %36, %1, %cst_20 {dimension_numbers = #tpu.dot_dimension_numbers<[1], [0], [0], [1], [0, 0, 1, 1], [], []>} : vector<16x64xbf16>, vector<64x64xbf16>, vector<16x64xf32> -> vector<16x64xf32>
    %38 = tpu.concatenate %37, %35 in 0 : vector<16x64xf32>, vector<16x64xf32> -> vector<32x64xf32>
    %39 = arith.truncf %38 : vector<32x64xf32> to vector<32x64xbf16>
    %c0_21 = arith.constant 0 : index
    %c0_22 = arith.constant 0 : index
    %40 = vector.load %arg7[%c0_21, %c0_22] : memref<16x32xbf16, #tpu.memory_space<vmem>>, vector<16x32xbf16>
    %cst_23 = arith.constant dense<0.000000e+00> : vector<16x64xf32>
    %41 = tpu.matmul %40, %39, %cst_23 {dimension_numbers = #tpu.dot_dimension_numbers<[1], [0], [0], [1], [0, 0, 1, 1], [], []>} : vector<16x32xbf16>, vector<32x64xbf16>, vector<16x64xf32> -> vector<16x64xf32>
    %c0_24 = arith.constant 0 : index
    %c0_25 = arith.constant 0 : index
    %42 = vector.load %arg8[%c0_24, %c0_25] : memref<16x1xf32, #tpu.memory_space<vmem>>, vector<16x1xf32>
    %43 = vector.broadcast %42 : vector<16x1xf32> to vector<16x64xf32>
    %44 = arith.addf %41, %43 : vector<16x64xf32>
    %cst_26 = arith.constant 0.000000e+00 : f32
    %45 = vector.broadcast %cst_26 : f32 to vector<16x64xf32>
    %46 = arith.subf %45, %44 : vector<16x64xf32>
    %47 = math.exp %46 : vector<16x64xf32>
    %cst_27 = arith.constant 1.000000e+00 : f32
    %48 = vector.broadcast %cst_27 : f32 to vector<16x64xf32>
    %49 = arith.addf %48, %47 : vector<16x64xf32>
    %50 = tpu.reciprocal %49 {approx = true} : vector<16x64xf32> -> vector<16x64xf32>
    %51 = arith.mulf %44, %50 : vector<16x64xf32>
    %52 = arith.truncf %51 : vector<16x64xf32> to vector<16x64xbf16>
    %cst_28 = arith.constant dense<0.000000e+00> : vector<16x64xf32>
    %53 = tpu.matmul %52, %1, %cst_28 {dimension_numbers = #tpu.dot_dimension_numbers<[1], [0], [0], [1], [0, 0, 1, 1], [], []>} : vector<16x64xbf16>, vector<64x64xbf16>, vector<16x64xf32> -> vector<16x64xf32>
    %54 = tpu.concatenate %53, %51 in 0 : vector<16x64xf32>, vector<16x64xf32> -> vector<32x64xf32>
    %55 = arith.truncf %54 : vector<32x64xf32> to vector<32x64xbf16>
    %c0_29 = arith.constant 0 : index
    %c0_30 = arith.constant 0 : index
    %56 = vector.load %arg9[%c0_29, %c0_30] : memref<16x32xbf16, #tpu.memory_space<vmem>>, vector<16x32xbf16>
    %cst_31 = arith.constant dense<0.000000e+00> : vector<16x64xf32>
    %57 = tpu.matmul %56, %55, %cst_31 {dimension_numbers = #tpu.dot_dimension_numbers<[1], [0], [0], [1], [0, 0, 1, 1], [], []>} : vector<16x32xbf16>, vector<32x64xbf16>, vector<16x64xf32> -> vector<16x64xf32>
    %c0_32 = arith.constant 0 : index
    %c0_33 = arith.constant 0 : index
    %58 = vector.load %arg10[%c0_32, %c0_33] : memref<16x1xf32, #tpu.memory_space<vmem>>, vector<16x1xf32>
    %59 = vector.broadcast %58 : vector<16x1xf32> to vector<16x64xf32>
    %60 = arith.addf %57, %59 : vector<16x64xf32>
    %cst_34 = arith.constant 0.000000e+00 : f32
    %61 = vector.broadcast %cst_34 : f32 to vector<16x64xf32>
    %62 = arith.subf %61, %60 : vector<16x64xf32>
    %63 = math.exp %62 : vector<16x64xf32>
    %cst_35 = arith.constant 1.000000e+00 : f32
    %64 = vector.broadcast %cst_35 : f32 to vector<16x64xf32>
    %65 = arith.addf %64, %63 : vector<16x64xf32>
    %66 = tpu.reciprocal %65 {approx = true} : vector<16x64xf32> -> vector<16x64xf32>
    %67 = arith.mulf %60, %66 : vector<16x64xf32>
    %c0_36 = arith.constant 0 : index
    %c0_37 = arith.constant 0 : index
    %68 = vector.load %arg11[%c0_36, %c0_37] : memref<32x16xbf16, #tpu.memory_space<vmem>>, vector<32x16xbf16>
    %69 = arith.truncf %67 : vector<16x64xf32> to vector<16x64xbf16>
    %cst_38 = arith.constant dense<0.000000e+00> : vector<32x64xf32>
    %70 = tpu.matmul %68, %69, %cst_38 {dimension_numbers = #tpu.dot_dimension_numbers<[1], [0], [0], [1], [0, 0, 1, 1], [], []>} : vector<32x16xbf16>, vector<16x64xbf16>, vector<32x64xf32> -> vector<32x64xf32>
    %c0_39 = arith.constant 0 : index
    %c0_40 = arith.constant 0 : index
    %71 = vector.load %arg12[%c0_39, %c0_40] : memref<32x1xf32, #tpu.memory_space<vmem>>, vector<32x1xf32>
    %72 = vector.broadcast %71 : vector<32x1xf32> to vector<32x64xf32>
    %73 = arith.addf %70, %72 : vector<32x64xf32>
    %cst_41 = arith.constant 0.000000e+00 : f32
    %74 = vector.broadcast %cst_41 : f32 to vector<32x64xf32>
    %75 = arith.subf %74, %73 : vector<32x64xf32>
    %76 = math.exp %75 : vector<32x64xf32>
    %cst_42 = arith.constant 1.000000e+00 : f32
    %77 = vector.broadcast %cst_42 : f32 to vector<32x64xf32>
    %78 = arith.addf %77, %76 : vector<32x64xf32>
    %79 = tpu.reciprocal %78 {approx = true} : vector<32x64xf32> -> vector<32x64xf32>
    %80 = arith.mulf %73, %79 : vector<32x64xf32>
    %c0_43 = arith.constant 0 : index
    %c0_44 = arith.constant 0 : index
    %81 = vector.load %arg13[%c0_43, %c0_44] : memref<32x32xbf16, #tpu.memory_space<vmem>>, vector<32x32xbf16>
    %82 = arith.truncf %80 : vector<32x64xf32> to vector<32x64xbf16>
    %cst_45 = arith.constant dense<0.000000e+00> : vector<32x64xf32>
    %83 = tpu.matmul %81, %82, %cst_45 {dimension_numbers = #tpu.dot_dimension_numbers<[1], [0], [0], [1], [0, 0, 1, 1], [], []>} : vector<32x32xbf16>, vector<32x64xbf16>, vector<32x64xf32> -> vector<32x64xf32>
    %c0_46 = arith.constant 0 : index
    %c0_47 = arith.constant 0 : index
    %84 = vector.load %arg14[%c0_46, %c0_47] : memref<32x1xf32, #tpu.memory_space<vmem>>, vector<32x1xf32>
    %85 = vector.broadcast %84 : vector<32x1xf32> to vector<32x64xf32>
    %86 = arith.addf %83, %85 : vector<32x64xf32>
    %cst_48 = arith.constant 0.000000e+00 : f32
    %87 = vector.broadcast %cst_48 : f32 to vector<32x64xf32>
    %88 = arith.subf %87, %86 : vector<32x64xf32>
    %89 = math.exp %88 : vector<32x64xf32>
    %cst_49 = arith.constant 1.000000e+00 : f32
    %90 = vector.broadcast %cst_49 : f32 to vector<32x64xf32>
    %91 = arith.addf %90, %89 : vector<32x64xf32>
    %92 = tpu.reciprocal %91 {approx = true} : vector<32x64xf32> -> vector<32x64xf32>
    %93 = arith.mulf %86, %92 : vector<32x64xf32>
    %c0_50 = arith.constant 0 : index
    %c0_51 = arith.constant 0 : index
    %94 = vector.load %arg15[%c0_50, %c0_51] : memref<1x32xbf16, #tpu.memory_space<vmem>>, vector<1x32xbf16>
    %95 = arith.truncf %93 : vector<32x64xf32> to vector<32x64xbf16>
    %cst_52 = arith.constant dense<0.000000e+00> : vector<1x64xf32>
    %96 = tpu.matmul %94, %95, %cst_52 {dimension_numbers = #tpu.dot_dimension_numbers<[1], [0], [0], [1], [0, 0, 1, 1], [], []>} : vector<1x32xbf16>, vector<32x64xbf16>, vector<1x64xf32> -> vector<1x64xf32>
    %c0_53 = arith.constant 0 : index
    %c0_54 = arith.constant 0 : index
    %97 = vector.load %arg16[%c0_53, %c0_54] : memref<1x1xf32, #tpu.memory_space<vmem>>, vector<1x1xf32>
    %98 = vector.broadcast %97 : vector<1x1xf32> to vector<1x64xf32>
    %99 = arith.addf %96, %98 : vector<1x64xf32>
    %c0_55 = arith.constant 0 : index
    %c0_56 = arith.constant 0 : index
    %c0_57 = arith.constant 0 : index
    %100 = vector.load %arg17[%c0_55, %c0_56, %c0_57] : memref<1x1x64xf32, #tpu.memory_space<vmem>>, vector<1x1x64xf32>
    %101 = vector.shape_cast %100 : vector<1x1x64xf32> to vector<1x64xf32>
    %102 = vector.shape_cast %99 : vector<1x64xf32> to vector<1x1x64xf32>
    tpu.vector_store %arg17[%c0_55, %c0_56, %c0_57], %102 {strides = array<i32>} : memref<1x1x64xf32, #tpu.memory_space<vmem>>, vector<1x1x64xf32>,
    return
  }
  func.func @transform_0(%arg0: i32) -> (i32, i32, i32) {
    %c0_i32 = arith.constant 0 : i32
    %c0_i32_0 = arith.constant 0 : i32
    %c0_i32_1 = arith.constant 0 : i32
    return %arg0, %c0_i32, %c0_i32_0 : i32, i32, i32
  }
  func.func @transform_1(%arg0: i32) -> (i32, i32, i32) {
    %c0_i32 = arith.constant 0 : i32
    %c0_i32_0 = arith.constant 0 : i32
    %c0_i32_1 = arith.constant 0 : i32
    return %arg0, %c0_i32, %c0_i32_0 : i32, i32, i32
  }
  func.func @transform_2(%arg0: i32) -> (i32, i32) {
    %c0_i32 = arith.constant 0 : i32
    %c0_i32_0 = arith.constant 0 : i32
    %c0_i32_1 = arith.constant 0 : i32
    return %c0_i32, %c0_i32_0 : i32, i32
  }
  func.func @transform_3(%arg0: i32) -> (i32, i32) {
    %c0_i32 = arith.constant 0 : i32
    %c0_i32_0 = arith.constant 0 : i32
    %c0_i32_1 = arith.constant 0 : i32
    return %c0_i32, %c0_i32_0 : i32, i32
  }
  func.func @transform_4(%arg0: i32) -> (i32, i32) {
    %c0_i32 = arith.constant 0 : i32
    %c0_i32_0 = arith.constant 0 : i32
    %c0_i32_1 = arith.constant 0 : i32
    return %c0_i32, %c0_i32_0 : i32, i32
  }
  func.func @transform_5(%arg0: i32) -> (i32, i32) {
    %c0_i32 = arith.constant 0 : i32
    %c0_i32_0 = arith.constant 0 : i32
    %c0_i32_1 = arith.constant 0 : i32
    return %c0_i32, %c0_i32_0 : i32, i32
  }
  func.func @transform_6(%arg0: i32) -> (i32, i32) {
    %c0_i32 = arith.constant 0 : i32
    %c0_i32_0 = arith.constant 0 : i32
    %c0_i32_1 = arith.constant 0 : i32
    return %c0_i32, %c0_i32_0 : i32, i32
  }
  func.func @transform_7(%arg0: i32) -> (i32, i32) {
    %c0_i32 = arith.constant 0 : i32
    %c0_i32_0 = arith.constant 0 : i32
    %c0_i32_1 = arith.constant 0 : i32
    return %c0_i32, %c0_i32_0 : i32, i32
  }
  func.func @transform_8(%arg0: i32) -> (i32, i32) {
    %c0_i32 = arith.constant 0 : i32
    %c0_i32_0 = arith.constant 0 : i32
    %c0_i32_1 = arith.constant 0 : i32
    return %c0_i32, %c0_i32_0 : i32, i32
  }
  func.func @transform_9(%arg0: i32) -> (i32, i32) {
    %c0_i32 = arith.constant 0 : i32
    %c0_i32_0 = arith.constant 0 : i32
    %c0_i32_1 = arith.constant 0 : i32
    return %c0_i32, %c0_i32_0 : i32, i32
  }
  func.func @transform_10(%arg0: i32) -> (i32, i32) {
    %c0_i32 = arith.constant 0 : i32
    %c0_i32_0 = arith.constant 0 : i32
    %c0_i32_1 = arith.constant 0 : i32
    return %c0_i32, %c0_i32_0 : i32, i32
  }
  func.func @transform_11(%arg0: i32) -> (i32, i32) {
    %c0_i32 = arith.constant 0 : i32
    %c0_i32_0 = arith.constant 0 : i32
    %c0_i32_1 = arith.constant 0 : i32
    return %c0_i32, %c0_i32_0 : i32, i32
  }
  func.func @transform_12(%arg0: i32) -> (i32, i32) {
    %c0_i32 = arith.constant 0 : i32
    %c0_i32_0 = arith.constant 0 : i32
    %c0_i32_1 = arith.constant 0 : i32
    return %c0_i32, %c0_i32_0 : i32, i32
  }
  func.func @transform_13(%arg0: i32) -> (i32, i32) {
    %c0_i32 = arith.constant 0 : i32
    %c0_i32_0 = arith.constant 0 : i32
    %c0_i32_1 = arith.constant 0 : i32
    return %c0_i32, %c0_i32_0 : i32, i32
  }
  func.func @transform_14(%arg0: i32) -> (i32, i32) {
    %c0_i32 = arith.constant 0 : i32
    %c0_i32_0 = arith.constant 0 : i32
    %c0_i32_1 = arith.constant 0 : i32
    return %c0_i32, %c0_i32_0 : i32, i32
  }
  func.func @transform_15(%arg0: i32) -> (i32, i32) {
    %c0_i32 = arith.constant 0 : i32
    %c0_i32_0 = arith.constant 0 : i32
    %c0_i32_1 = arith.constant 0 : i32
    return %c0_i32, %c0_i32_0 : i32, i32
  }
  func.func @transform_16(%arg0: i32) -> (i32, i32, i32) {
    %c0_i32 = arith.constant 0 : i32
    %c0_i32_0 = arith.constant 0 : i32
    %c0_i32_1 = arith.constant 0 : i32
    return %arg0, %c0_i32, %c0_i32_0 : i32, i32, i32
  }
}

</mosaic_0001>

<bundles_post_ra>
// kernel: tpu_custom_call.1
= control target key start
LH: loop header
LB: loop body
LE: loop exit
PB: predicated region body
PF: predicated region fallthrough
CT: control target
= control target key end

     0   :  { %s2284_s0 = inlined_call_operand.hbm [shape: bf16[8,64,64], index: 0, kind: input, shape index: {}]   ;;  %s2285_s1 = inlined_call_operand.vmem [shape: f32[8,8,64], index: 1, kind: input, shape index: {}]   ;;  %s2286_s2 = inlined_call_operand.vmem [shape: bf16[16,16], index: 2, kind: input, shape index: {}]   ;;  %s2287_s3 = inlined_call_operand.vmem [shape: f32[16,1], index: 3, kind: input, shape index: {}]   ;;  %s2288_s4 = inlined_call_operand.vmem [shape: bf16[16,32], index: 4, kind: input, shape index: {}]   ;;  %s2289_s5 = inlined_call_operand.vmem [shape: f32[16,1], index: 5, kind: input, shape index: {}]   ;;  %s2290_s6 = inlined_call_operand.vmem [shape: bf16[16,32], index: 6, kind: input, shape index: {}]   ;;  %s2291_s7 = inlined_call_operand.vmem [shape: f32[16,1], index: 7, kind: input, shape index: {}]   ;;  %s2292_s8 = inlined_call_operand.vmem [shape: bf16[16,32], index: 8, kind: input, shape index: {}]   ;;  %s2293_s9 = inlined_call_operand.vmem [shape: f32[16,1], index: 9, kind: input, shape index: {}]   ;;  %s2294_s10 = inlined_call_operand.vmem [shape: bf16[32,16], index: 10, kind: input, shape index: {}]   ;;  %s2295_s11 = inlined_call_operand.vmem [shape: f32[32,1], index: 11, kind: input, shape index: {}]   ;;  %s2296_s12 = inlined_call_operand.vmem [shape: bf16[32,32], index: 12, kind: input, shape index: {}]   ;;  %s2297_s13 = inlined_call_operand.vmem [shape: f32[32,1], index: 13, kind: input, shape index: {}]   ;;  %s2298_s14 = inlined_call_operand.vmem [shape: bf16[1,32], index: 14, kind: input, shape index: {}]   ;;  %s2299_s15 = inlined_call_operand.<no memory space> [shape: f32[1,1], index: 15, kind: input, shape index: {}]   ;;  %s2300_s16 = inlined_call_operand.hbm [shape: f32[8,1,64], index: 16, kind: output, shape index: {}]  }
   0x1   :  { %2310 = sst [smem:[#allocation14_spill]] %s2284_s0  ;;  %v21_v0 = vstv %s2299_s15 }
   0x2   :  { %2311 = sst [smem:[#allocation15_spill]] %s2300_s16  ;;  %22 = vst [vmem:[#allocation2] sm:$0x1] %v21_v0 }
   0x3   :  { %23 = vsyncpa [#allocation4], 0 }
   0x4   :  { %25 = vsyncpa [#allocation4 + $0x1], 0 }
   0x5   :  { %26 = vsyncpa [#allocation5], 0 }
   0x6   :  { %28 = vsyncpa [#allocation5 + $0x1], 0  ;;  %s1965_s23 = smov 0   ;;  %s1967_s24 = smov 0  }
   0x7   :  { %s1969_s25 = smov 0   ;;  %s1971_s26 = smov 0  }
   0x8 LB: > { %2312 = sst [smem:[#allocation9_spill]] %s1856_s23  ;;  %s1986_s15 = sadd.s32 4294967295, %s1868_s26   ;;  %s1868_s26 = sphi %s1971_s26, %s2328_s26   ;;  %s1864_s25 = sphi %s1969_s25, %s2330_s25   ;;  %s1860_s24 = sphi %s1967_s24, %s2332_s24   ;;  %s1856_s23 = sphi %s1965_s23, %s2331_s23  }
   0x9   : > { %2313 = sst [smem:[#allocation10_spill]] %s1864_s25  ;;  %s1464_s27 = sadd.s32 4294967294, %s1868_s26  }
   0xa   : > { %s1990_s28 = sadd.s32 1, %s1868_s26   ;;  %s41_s29 = sadd.s32 1, %s1864_s25 }
   0xb   : > { %2314 = sst [smem:[#allocation11_spill]] %s1990_s28  ;;  %s38_s30 = ssub.s32 %s1868_s26, %s1990_s28 }
   0xc   : > { %p48_p0 = scmp.ne.s32.totalorder %s1864_s25, %s1860_s24  ;;  %p39_p1 = scmp.eq.s32.totalorder %s38_s30, 0 }
   0xd   : > { %p49_p2 = scmp.eq.s32.totalorder %s1868_s26, 0  ;;  %p54_p3 = scmp.ne.s32.totalorder %s1860_s24, %s1856_s23 }
   0xe   : > { %p55_p4 = scmp.eq.s32.totalorder %s1986_s15, 0  ;;  %p398_p7 = scmp.eq.s32.totalorder %s1986_s15, 7 }
   0xf   : > { %s2002_s0 = scalar_select %p39_p1, %s1864_s25, %s41_s29  }
  0x10   : > { %p2004_p5 = por %p49_p2, %p48_p0  ;;  %p2008_p6 = por %p55_p4, %p54_p3 }
  0x11   : > { %2315 = sst [smem:[#allocation12_spill]] %s2002_s0  ;;  %p404_p8 = scmp.eq.s32.totalorder %s1464_s27, 7 }
  0x12   : > { %p1655_p9 = scmp.lt.s32.totalorder %s1868_s26, 8  ;;  %p2014_p10 = por %p398_p7, %p48_p0 }
  0x13   : > { %p2018_p11 = por %p404_p8, %p54_p3  ;;  %s466_s21 = sand.u32 1, %s1864_s25  }
  0x14   : > { %s2318_s19 = scalar_select %p2014_p10, 1, 0 }
  0x15   : > { %s2320_s20 = scalar_select %p2018_p11, 1, 0 }
  0x16   : > { %2319 = sst [smem:[#allocation13_spill]] %s2318_s19  ;;  %s1501_s22 = sshll.u32 %s1868_s26, 9 }
  0x17   : > { %s1467_s29 = sshll.u32 %s466_s21, 5  ;;  %s2321_s28 = sld [smem:[#allocation14_spill]] }
  0x18   : > { %s470_s27 = scalar_lea.vmem [#allocation3], %s1467_s29  ;;  %p2031_p12 = pnand %p1655_p9, %p2004_p5 }
  0x19   : > { %s477_s16 = sshll.u32 %s470_s27, 4  ;;  %s2037_s25 = scalar_lea.sflag [#allocation4], %s466_s21  ;;  %s2035_s16 = int_to_ptr.vmem [resolvable:$true] %s477_s16 }
  0x1a   : > { %p1774_p0 = pneg %p2031_p12 }
  0x1d   : > { %s2027_s23 = scalar_lea.hbm %s2321_s28, %s1501_s22  ;;  %s1777_s29 = scalar_lea.hbm %s2321_s28, 4096 }
  0x1e   : > { %s1772_s0 = scalar_lea.hbm %s2027_s23, 512  ;;  %p1778_p3 = scmp.lt.u32.totalorder %s2027_s23, %s2321_s28 }
  0x1f   : > { %p1773_p13 = scmp.ne.s32.totalorder %s2027_s23, %s1772_s0  ;;  %p1779_p4 = scmp.lt.u32.totalorder %s1777_s29, %s1772_s0 }
  0x20   : > { %p1781_p7 = scmp.lt.u32.totalorder %s1772_s0, %s2027_s23 }
  0x21   : > { %p1775_p1 = pnand %p1774_p0, %p1773_p13  ;;  %p1780_p5 = por %p1779_p4, %p1778_p3 }
  0x23   : > { %p1776_p2 = pneg %p1775_p1  ;;  %p1782_p8 = por %p1781_p7, %p1780_p5 }
  0x25   : > { %p1783_p9 = pnand %p1782_p8, %p1776_p2 }
  0x27   : > { %1786 = shalt.err (!%p1783_p9)
}
  0x28   : > { %s1787_s21 = scalar_lea.vmem %s2035_s16, 512  ;;  %s1870_s22 = smov [#allocation3]  }
  0x29   : > { %p1788_p13 = scmp.ne.s32.totalorder %s2035_s16, %s1787_s21  ;;  %s1792_s17 = sshll.u32 %s1870_s22, 4  ;;  %s1793_s17 = int_to_ptr.vmem [resolvable:$false] %s1792_s17 }
  0x2a   : > { %s1794_s30 = scalar_lea.vmem %s1793_s17, 1024  ;;  %p1795_p10 = scmp.lt.s32.totalorder %s2035_s16, %s1793_s17 }
  0x2b   : > { %p1790_p1 = pnand %p1788_p13, %p1774_p0  ;;  %p1796_p3 = scmp.lt.s32.totalorder %s1794_s30, %s1787_s21 }
  0x2d   : > { %p1791_p11 = pneg %p1790_p1  ;;  %p1797_p4 = por %p1796_p3, %p1795_p10 }
  0x2f   : > { %p1798_p5 = pnand %p1797_p4, %p1791_p11 }
  0x31   : > { %1801 = shalt.err (!%p1798_p5)
}
  0x32   : > { %s1871_s0 = smov 64   ;;  %s1872_s29 = smov 4  }
  0x33   : > { %1650 = dma.hbm_to_vmem [thread:$0]  (!%p2031_p12), %s2027_s23, 512, %s2035_s16, %s2037_s25, %s1871_s0, %s1871_s0, %s1872_s29  }
  0x34   : > { %p1470_p0 = scmp.ge.s32.totalorder %s1868_s26, 1  ;;  %p492_p2 = scmp.lt.s32.totalorder %s1868_s26, 9 }
  0x36   : > { %p493_p7 = pnand %p1470_p0, %p492_p2 }
  0x37   : > { %s2068_s27 = sand.u32 (!%p493_p7), 1, %s1860_s24  }
  0x38   : > { %496 = sbr.rel (%p493_p7) target bundleno = 2705 (0xa91), region = 84  ;;  %s1471_s21 = sshll.u32 (!%p493_p7), %s2068_s27, 5 }
  0x39   : > { %s499_s22 = scalar_lea.sflag (!%p493_p7), [#allocation4], %s2068_s27  ;;  %s502_s17 = scalar_lea.vmem (!%p493_p7), [#allocation3], %s1471_s21 }
  0x3f   : > { %1847 = dma.done.wait (%p2008_p6), %s499_s22, 512  }
  0x40   : > { %1849 = vsyncadd (%p2008_p6), %s499_s22, 4294966784  ;;  %v1873_v1 = vmov 0.0   ;;  %vm1874_vm0 = vmmov 0   ;;  %p554_p10 = scmp.lt.s32.totalorder %s1986_s15, 7  ;;  %v2083_v2 = vld [vmem:[%s502_s17] sm:$0xff]   ;;  %v2087_v3 = vld [vmem:[%s502_s17 + $0x8] sm:$0xff]  }
  0x41   : > { %1543 = vmatprep.subr.bf16.mxu0 %v1873_v1  ;;  %1551 = vmatprep.mubr.msk.bf16.mxu0 %vm1874_vm0, %v1873_v1  ;;  %v2090_v4 = vld [vmem:[%s502_s17 + $0x10] sm:$0xff]   ;;  %v2098_v5 = vld [vmem:[%s502_s17 + $0x18] sm:$0xff]   ;;  %vm593_vm1 = vcmask 523264   ;;  %v1875_v9 = vmov 0   ;;  %v641_v10 = vld [vmem:[%s2287_s3 + $0x8] sm:$0xff]  ;;  %vm657_vm2 = vcmask 130048  }
  0x42   : > { %1555 = vmatprep.subr.bf16.mxu1 %v1873_v1  ;;  %1557 = vmatprep.mubr.msk.bf16.mxu1 %vm1874_vm0, %v1873_v1  ;;  %s555_s16 = scalar_select %p554_p10, %s1986_s15, 7  ;;  %v640_v8 = vld [vmem:[%s2287_s3] sm:$0xff]  ;;  %v1085_v14 = vld [vmem:[%s2295_s11 + $0x10] sm:$0xff]  ;;  %v763_v46 = vld [vmem:[%s2289_s5 + $0x8] sm:$0xff]  ;;  %vm779_vm3 = vcmask 261120   ;;  %vm1371_vm4 = vcmask 516096  }
  0x43   : > { %1544 = vmatpush3.bf16.msra.mxu0 %v2083_v2  ;;  %1694 = vset.pattern.permute.xlu0 %v1875_v9  ;;  %v884_v11 = vld [vmem:[%s2291_s7] sm:$0xff]  ;;  %v1204_v16 = vld [vmem:[%s2297_s13 + $0x10] sm:$0xff]  ;;  %v885_v47 = vld [vmem:[%s2291_s7 + $0x8] sm:$0xff]  ;;  %s553_s25 = scalar_lea.vmem [#allocation6], %s2068_s27  ;;  %s2324_s0 = sld [smem:[#allocation15_spill]] }
  0x44   : > { %1545 = vmatprep.subr.bf16.mxu0 %v1873_v1  ;;  %s1472_s23 = sshll.u32 %s555_s16, 3  ;;  %1695 = vset.pattern.permute.xlu1 %v1875_v9  ;;  %v1005_v12 = vld [vmem:[%s2293_s9] sm:$0xff]  ;;  %v1006_v48 = vld [vmem:[%s2293_s9 + $0x8] sm:$0xff]  ;;  %v1086_v50 = vld [vmem:[%s2295_s11 + $0x18] sm:$0xff]  ;;  %s1498_s16 = sshll.u32 %s1986_s15, 4 }
  0x45   : > { %s557_s19 = scalar_lea.vmem %s2285_s1, %s1472_s23  ;;  %644 = vperm.xlu0 %1694, %v640_v8   ;;  %v1083_v13 = vld [vmem:[%s2295_s11] sm:$0xff]  ;;  %v1084_v49 = vld [vmem:[%s2295_s11 + $0x8] sm:$0xff]  ;;  %v1205_v52 = vld [vmem:[%s2297_s13 + $0x18] sm:$0xff]  ;;  %s2323_s23 = sld [smem:[#allocation13_spill]] }
  0x46   : > { %v567_v6 = vld [vmem:[%s557_s19] sm:$0xff]  ;;  %v1203_v51 = vld [vmem:[%s2297_s13 + $0x8] sm:$0xff]  ;;  %s1386_s18 = sshll.u32 %s553_s25, 4  ;;  %s1374_s15 = scalar_lea.sflag [#allocation5], %s2068_s27  ;;  %s2243_s18 = int_to_ptr.vmem [resolvable:$true] %s1386_s18 }
  0x47   : > { %1546 = vmatpush3.bf16.msra.mxu0 %v2087_v3  ;;  %v568_v7 = vpack.c.bf16 %v567_v6, %v567_v6  ;;  %v1202_v15 = vld [vmem:[%s2297_s13] sm:$0xff]  ;;  %s1802_s21 = scalar_lea.vmem %s2243_s18, 16  ;;  %s1876_s22 = smov [#allocation6]  }
  0x48   : > { %1547 = vmatprep.subr.bf16.mxu0 %v1873_v1  ;;  %v1318_v17 = vld [vmem:[#allocation2] sm:$0x1]  ;;  %p1803_p6 = scmp.ne.s32.totalorder %s2243_s18, %s1802_s21  ;;  %s1806_s17 = sshll.u32 %s1876_s22, 4  ;;  %s1807_s17 = int_to_ptr.vmem [resolvable:$false] %s1806_s17 }
  0x49   : > { %649 = vperm.xlu0 %1694, %v641_v10   ;;  %v1700_v22 = vld [vmem:[%s2286_s2] sm:$0xff]   ;;  %s2241_s29 = scalar_lea.hbm %s2324_s0, %s1498_s16  ;;  %s1808_s19 = scalar_lea.vmem %s1807_s17, 32 }
  0x4a   : > { %v762_v45 = vld [vmem:[%s2289_s5] sm:$0xff]  ;;  %p1809_p9 = scmp.lt.s32.totalorder %s2243_s18, %s1807_s17  ;;  %p1810_p13 = scmp.lt.s32.totalorder %s1808_s19, %s1802_s21 }
  0x4b   : > { %1548 = vmatpush3.bf16.msra.mxu0 %v2090_v4  ;;  %766 = vperm.xlu1 %1695, %v762_v45   ;;  %v1701_v58 = vld [vmem:[%s2288_s4] sm:$0xff]   ;;  %p2325_p11 = scmp.ne.s32.totalorder %s2323_s23, 0 }
  0x4c   : > { %1549 = vmatprep.subr.bf16.mxu0 %v1873_v1  ;;  %p1811_p1 = por %p1810_p13, %p1809_p9 }
  0x4d   : > { %888 = vperm.xlu0 %1694, %v884_v11   ;;  %p1804_p12 = pnand %p1803_p6, %p2325_p11 }
  0x4f   : > { %1550 = vmatpush3.bf16.msra.mxu0 %v2098_v5  ;;  %771 = vperm.xlu1 %1695, %v763_v46   ;;  %p1805_p8 = pneg %p1804_p12 }
  0x50   : > { %1573 = vmatprep.subr.bf16.mxu0 %v1873_v1 }
  0x51   : > { %1009 = vperm.xlu0 %1694, %v1005_v12   ;;  %p1812_p3 = pnand %p1811_p1, %p1805_p8 }
  0x52   : > { %1552 = vmatmul.mubr.msk.bf16.vlgmr.msra.gmra.mrb[0].mxu0 %vm593_vm1, %v568_v7 }
  0x53   : > { %1577 = vmatprep.mubr.msk.bf16.mxu0 %vm1874_vm0, %v1873_v1  ;;  %893 = vperm.xlu1 %1695, %v885_v47  }
  0x55   : > { %1089 = vperm.xlu0 %1694, %v1083_v13  }
  0x57   : > { %1014 = vperm.xlu1 %1695, %v1006_v48  }
  0x59   : > { %1099 = vperm.xlu0 %1694, %v1085_v14  }
  0x5b   : > { %1094 = vperm.xlu1 %1695, %v1084_v49   ;;  %v1703_v49 = vld [vmem:[%s2292_s8] sm:$0xff]  }
  0x5d   : > { %1208 = vperm.xlu0 %1694, %v1202_v15  }
  0x5f   : > { %1104 = vperm.xlu1 %1695, %v1086_v50   ;;  %v1704_v50 = vld [vmem:[%s2294_s10] sm:$0xff]  }
  0x61   : > { %1218 = vperm.xlu0 %1694, %v1204_v16  }
  0x63   : > { %1213 = vperm.xlu1 %1695, %v1203_v51  }
  0x65   : > { %1321 = vperm.xlu0 %1694, %v1318_v17  }
  0x67   : > { %1223 = vperm.xlu1 %1695, %v1205_v52  }
  0xc4   : > { %v645_v24 = vpop.permute.xlu0 %644 }
  0xc8   : > { %v650_v28 = vpop.permute.xlu0 %649 }
  0xca   : > { %v767_v59 = vpop.permute.xlu1 %766 }
  0xce   : > { %v772_v63 = vpop.permute.xlu1 %771 }
 0x125   : > { %v631_v18 = vpop.f32.mrb[0].mxu0 }
 0x126   : > { %v637_v19 = vpack.c.bf16 %v567_v6, %v631_v18  ;;  %v1553_v20 = vpop.f32.mrb[1].mxu0 }
 0x127   : > { %v634_v21 = vpop.f32.mrb[2].mxu0 }
 0x128   : > { %v1554_v23 = vpop.f32.mrb[3].mxu0  ;;  %1556 = vmatpush3.bf16.msra.mxu1 %v637_v19 }
 0x129   : > { %1561 = vmatprep.subr.bf16.mxu1 %v1873_v1 }
 0x12b   : > { %1558 = vmatmul.mubr.msk.bf16.vlgmr.msra.gmra.mrb[0].mxu1 %vm657_vm2, %v1700_v22 }
 0x12c   : > { %1562 = vmatpush3.bf16.msra.mxu1 %v2083_v2  ;;  %1569 = vmatprep.mubr.msk.bf16.mxu1 %vm1874_vm0, %v1873_v1 }
 0x12d   : > { %1563 = vmatprep.subr.bf16.mxu1 %v1873_v1 }
 0x130   : > { %1564 = vmatpush3.bf16.msra.mxu1 %v2087_v3 }
 0x131   : > { %1565 = vmatprep.subr.bf16.mxu1 %v1873_v1 }
 0x134   : > { %1566 = vmatpush3.bf16.msra.mxu1 %v2090_v4 }
 0x135   : > { %1567 = vmatprep.subr.bf16.mxu1 %v1873_v1 }
 0x138   : > { %1568 = vmatpush3.bf16.msra.mxu1 %v2098_v5 }
 0x139   : > { %1581 = vmatprep.subr.bf16.mxu1 %v1873_v1 }
 0x1fe   : > { %v695_v25 = vpop.f32.mrb[0].mxu1 }
 0x1ff   : > { %v696_v26 = vadd.f32 %v695_v25, %v645_v24  ;;  %v1559_v27 = vpop.f32.mrb[1].mxu1 }
 0x200   : > { %v698_v29 = vpop.f32.mrb[2].mxu1  ;;  %v889_v27 = vpop.permute.xlu0 %888 }
 0x201   : > { %v702_v30 = vsub.f32 0.0, %v696_v26  ;;  %v699_v31 = vadd.f32 %v698_v29, %v650_v28  ;;  %v1560_v32 = vpop.f32.mrb[3].mxu1 }
 0x203   : > { %v704_v33 = vmul.f32 1.442695, %v702_v30  ;;  %v703_v34 = vsub.f32 0.0, %v699_v31 }
 0x204   : > { %v1010_v51 = vpop.permute.xlu0 %1009 }
 0x205   : > { %1708 = vpow2.f32 %v704_v33  ;;  %v706_v35 = vmul.f32 1.442695, %v703_v34 }
 0x207   : > { %1710 = vpow2.f32 %v706_v35 }
 0x20f   : > { %v1709_v36 = vpop.eup %1708 }
 0x210   : > { %v708_v37 = vadd.f32 1.0, %v1709_v36 }
 0x211   : > { %v1711_v38 = vpop.eup %1710 }
 0x212   : > { %1712 = vrcp.f32 %v708_v37  ;;  %v709_v39 = vadd.f32 1.0, %v1711_v38 }
 0x214   : > { %1714 = vrcp.f32 %v709_v39 }
 0x21c   : > { %v1713_v40 = vpop.eup %1712 }
 0x21d   : > { %v712_v42 = vmul.f32 %v1713_v40, %v696_v26  ;;  %v1702_v26 = vld [vmem:[%s2290_s6] sm:$0xff]  }
 0x21e   : > { %v1715_v41 = vpop.eup %1714 }
 0x21f   : > { %v713_v43 = vmul.f32 %v1715_v41, %v699_v31 }
 0x221   : > { %v714_v44 = vpack.c.bf16 %v713_v43, %v712_v42 }
 0x223   : > { %1570 = vmatmul.mubr.msk.bf16.vlgmr.msra.gmra.mrb[4].mxu1 %vm593_vm1, %v714_v44 }
 0x224   : > { %1582 = vmatpush3.bf16.msra.mxu1 %v2083_v2  ;;  %1589 = vmatprep.mubr.msk.bf16.mxu1 %vm1874_vm0, %v1873_v1 }
 0x225   : > { %1583 = vmatprep.subr.bf16.mxu1 %v1873_v1 }
 0x228   : > { %1584 = vmatpush3.bf16.msra.mxu1 %v2087_v3 }
 0x229   : > { %1585 = vmatprep.subr.bf16.mxu1 %v1873_v1 }
 0x22c   : > { %1586 = vmatpush3.bf16.msra.mxu1 %v2090_v4 }
 0x22d   : > { %1587 = vmatprep.subr.bf16.mxu1 %v1873_v1 }
 0x230   : > { %1588 = vmatpush3.bf16.msra.mxu1 %v2098_v5 }
 0x231   : > { %1613 = vmatprep.subr.bf16.mxu1 %v1873_v1 }
 0x2f6   : > { %v752_v53 = vpop.f32.mrb[4].mxu1 }
 0x2f7   : > { %v1571_v54 = vpop.f32.mrb[5].mxu1 }
 0x2f8   : > { %v755_v55 = vpop.f32.mrb[6].mxu1 }
 0x2f9   : > { %v759_v56 = vpack.c.bf16 %v755_v55, %v752_v53  ;;  %v1572_v57 = vpop.f32.mrb[7].mxu1 }
 0x2fb   : > { %1574 = vmatpush3.bf16.msra.mxu0 %v759_v56 }
 0x2fc   : > { %1575 = vmatprep.subr.bf16.mxu0 %v1873_v1 }
 0x2ff   : > { %1576 = vmatpush3.bf16.msra.mxu0 %v714_v44 }
 0x300   : > { %1593 = vmatprep.subr.bf16.mxu0 %v1873_v1 }
 0x302   : > { %1578 = vmatmul.mubr.msk.bf16.vlgmr.msra.gmra.mrb[4].mxu0 %vm779_vm3, %v1701_v58 }
 0x303   : > { %1597 = vmatprep.mubr.msk.bf16.mxu0 %vm1874_vm0, %v1873_v1 }
 0x3d5   : > { %v817_v60 = vpop.f32.mrb[4].mxu0 }
 0x3d6   : > { %v818_v61 = vadd.f32 %v817_v60, %v767_v59  ;;  %v1579_v62 = vpop.f32.mrb[5].mxu0 }
 0x3d7   : > { %v820_v0 = vpop.f32.mrb[6].mxu0 }
 0x3d8   : > { %v824_v6 = vsub.f32 0.0, %v818_v61  ;;  %v821_v7 = vadd.f32 %v820_v0, %v772_v63  ;;  %v1580_v8 = vpop.f32.mrb[7].mxu0 }
 0x3da   : > { %v826_v9 = vmul.f32 1.442695, %v824_v6  ;;  %v825_v10 = vsub.f32 0.0, %v821_v7 }
 0x3dc   : > { %1716 = vpow2.f32 %v826_v9  ;;  %v828_v11 = vmul.f32 1.442695, %v825_v10 }
 0x3de   : > { %1718 = vpow2.f32 %v828_v11 }
 0x3e6   : > { %v1717_v12 = vpop.eup %1716 }
 0x3e7   : > { %v830_v13 = vadd.f32 1.0, %v1717_v12 }
 0x3e8   : > { %v1719_v14 = vpop.eup %1718 }
 0x3e9   : > { %1720 = vrcp.f32 %v830_v13  ;;  %v831_v15 = vadd.f32 1.0, %v1719_v14  ;;  %v1705_v13 = vld [vmem:[%s2294_s10 + $0x8] sm:$0xff]   ;;  %v1706_v14 = vld [vmem:[%s2296_s12] sm:$0xff]  }
 0x3eb   : > { %1722 = vrcp.f32 %v831_v15  ;;  %v1090_v15 = vpop.permute.xlu0 %1089 }
 0x3f3   : > { %v1721_v16 = vpop.eup %1720 }
 0x3f4   : > { %v834_v18 = vmul.f32 %v1721_v16, %v818_v61 }
 0x3f5   : > { %v1723_v17 = vpop.eup %1722 }
 0x3f6   : > { %v835_v19 = vmul.f32 %v1723_v17, %v821_v7  ;;  %v1100_v17 = vpop.permute.xlu0 %1099 }
 0x3f8   : > { %v836_v20 = vpack.c.bf16 %v835_v19, %v834_v18 }
 0x3fa   : > { %1590 = vmatmul.mubr.msk.bf16.vlgmr.msra.gmra.mrb[8].mxu1 %vm593_vm1, %v836_v20 }
 0x3fb   : > { %1617 = vmatprep.mubr.msk.bf16.mxu1 %vm1874_vm0, %v1873_v1 }
 0x4cd   : > { %v874_v21 = vpop.f32.mrb[8].mxu1 }
 0x4ce   : > { %v1591_v22 = vpop.f32.mrb[9].mxu1 }
 0x4cf   : > { %v877_v23 = vpop.f32.mrb[10].mxu1 }
 0x4d0   : > { %v881_v24 = vpack.c.bf16 %v877_v23, %v874_v21  ;;  %v1592_v25 = vpop.f32.mrb[11].mxu1 }
 0x4d2   : > { %1594 = vmatpush3.bf16.msra.mxu0 %v881_v24 }
 0x4d3   : > { %1595 = vmatprep.subr.bf16.mxu0 %v1873_v1 }
 0x4d6   : > { %1596 = vmatpush3.bf16.msra.mxu0 %v836_v20 }
 0x4d7   : > { %1601 = vmatprep.subr.bf16.mxu0 %v1873_v1 }
 0x4d9   : > { %1598 = vmatmul.mubr.msk.bf16.vlgmr.msra.gmra.mrb[8].mxu0 %vm779_vm3, %v1702_v26 }
 0x4da   : > { %1602 = vmatpush3.bf16.msra.mxu0 %v2083_v2  ;;  %1609 = vmatprep.mubr.msk.bf16.mxu0 %vm1874_vm0, %v1873_v1  ;;  %v894_v2 = vpop.permute.xlu1 %893 }
 0x4db   : > { %1603 = vmatprep.subr.bf16.mxu0 %v1873_v1 }
 0x4de   : > { %1604 = vmatpush3.bf16.msra.mxu0 %v2087_v3  ;;  %v1015_v55 = vpop.permute.xlu1 %1014 }
 0x4df   : > { %1605 = vmatprep.subr.bf16.mxu0 %v1873_v1 }
 0x4e2   : > { %1606 = vmatpush3.bf16.msra.mxu0 %v2090_v4  ;;  %v1095_v16 = vpop.permute.xlu1 %1094 }
 0x4e3   : > { %1607 = vmatprep.subr.bf16.mxu0 %v1873_v1 }
 0x4e6   : > { %1608 = vmatpush3.bf16.msra.mxu0 %v2098_v5  ;;  %v1105_v21 = vpop.permute.xlu1 %1104 }
 0x5ac   : > { %v938_v28 = vpop.f32.mrb[8].mxu0 }
 0x5ad   : > { %v939_v29 = vadd.f32 %v938_v28, %v889_v27  ;;  %v1599_v30 = vpop.f32.mrb[9].mxu0 }
 0x5ae   : > { %v941_v31 = vpop.f32.mrb[10].mxu0 }
 0x5af   : > { %v945_v32 = vsub.f32 0.0, %v939_v29  ;;  %v942_v33 = vadd.f32 %v941_v31, %v894_v2  ;;  %v1600_v34 = vpop.f32.mrb[11].mxu0 }
 0x5b1   : > { %v947_v35 = vmul.f32 1.442695, %v945_v32  ;;  %v946_v36 = vsub.f32 0.0, %v942_v33 }
 0x5b3   : > { %1724 = vpow2.f32 %v947_v35  ;;  %v949_v3 = vmul.f32 1.442695, %v946_v36 }
 0x5b5   : > { %1726 = vpow2.f32 %v949_v3 }
 0x5bd   : > { %v1725_v37 = vpop.eup %1724 }
 0x5be   : > { %v951_v4 = vadd.f32 1.0, %v1725_v37 }
 0x5bf   : > { %v1727_v38 = vpop.eup %1726 }
 0x5c0   : > { %1728 = vrcp.f32 %v951_v4  ;;  %v952_v39 = vadd.f32 1.0, %v1727_v38 }
 0x5c2   : > { %1730 = vrcp.f32 %v952_v39 }
 0x5ca   : > { %v1729_v5 = vpop.eup %1728 }
 0x5cb   : > { %v955_v41 = vmul.f32 %v1729_v5, %v939_v29 }
 0x5cc   : > { %v1731_v40 = vpop.eup %1730 }
 0x5cd   : > { %v956_v42 = vmul.f32 %v1731_v40, %v942_v33 }
 0x5cf   : > { %v957_v43 = vpack.c.bf16 %v956_v42, %v955_v41 }
 0x5d1   : > { %1610 = vmatmul.mubr.msk.bf16.vlgmr.msra.gmra.mrb[12].mxu0 %vm593_vm1, %v957_v43 }
 0x5d2   : > { %1631 = vmatprep.mubr.msk.bf16.mxu0 %vm779_vm3, %v1706_v14 }
 0x6a4   : > { %v995_v44 = vpop.f32.mrb[12].mxu0 }
 0x6a5   : > { %v1611_v45 = vpop.f32.mrb[13].mxu0 }
 0x6a6   : > { %v998_v46 = vpop.f32.mrb[14].mxu0 }
 0x6a7   : > { %v1002_v47 = vpack.c.bf16 %v998_v46, %v995_v44  ;;  %v1612_v48 = vpop.f32.mrb[15].mxu0 }
 0x6a9   : > { %1614 = vmatpush3.bf16.msra.mxu1 %v1002_v47 }
 0x6aa   : > { %1615 = vmatprep.subr.bf16.mxu1 %v1873_v1 }
 0x6ad   : > { %1616 = vmatpush3.bf16.msra.mxu1 %v957_v43 }
 0x6b0   : > { %1618 = vmatmul.mubr.msk.bf16.vlgmr.msra.gmra.mrb[12].mxu1 %vm779_vm3, %v1703_v49  ;;  %v1707_v49 = vld [vmem:[%s2296_s12 + $0x8] sm:$0xff]  }
 0x6b1   : > { %1623 = vmatprep.mubr.msk.bf16.mxu1 %vm657_vm2, %v1704_v50  ;;  %v1209_v50 = vpop.permute.xlu0 %1208 }
 0x783   : > { %v1059_v52 = vpop.f32.mrb[12].mxu1 }
 0x784   : > { %v1060_v53 = vadd.f32 %v1059_v52, %v1010_v51  ;;  %v1619_v54 = vpop.f32.mrb[13].mxu1  ;;  %v1214_v51 = vpop.permute.xlu1 %1213 }
 0x785   : > { %v1062_v56 = vpop.f32.mrb[14].mxu1  ;;  %v1219_v52 = vpop.permute.xlu0 %1218 }
 0x786   : > { %v1066_v57 = vsub.f32 0.0, %v1060_v53  ;;  %v1063_v58 = vadd.f32 %v1062_v56, %v1015_v55  ;;  %v1620_v59 = vpop.f32.mrb[15].mxu1 }
 0x788   : > { %v1068_v60 = vmul.f32 1.442695, %v1066_v57  ;;  %v1067_v61 = vsub.f32 0.0, %v1063_v58  ;;  %v1224_v56 = vpop.permute.xlu1 %1223 }
 0x78a   : > { %1732 = vpow2.f32 %v1068_v60  ;;  %v1070_v62 = vmul.f32 1.442695, %v1067_v61 }
 0x78c   : > { %1734 = vpow2.f32 %v1070_v62 }
 0x794   : > { %v1733_v63 = vpop.eup %1732 }
 0x795   : > { %v1072_v0 = vadd.f32 1.0, %v1733_v63 }
 0x796   : > { %v1735_v6 = vpop.eup %1734 }
 0x797   : > { %1736 = vrcp.f32 %v1072_v0  ;;  %v1073_v7 = vadd.f32 1.0, %v1735_v6 }
 0x799   : > { %1738 = vrcp.f32 %v1073_v7 }
 0x7a1   : > { %v1737_v8 = vpop.eup %1736 }
 0x7a2   : > { %v1076_v10 = vmul.f32 %v1737_v8, %v1060_v53 }
 0x7a3   : > { %v1739_v9 = vpop.eup %1738 }
 0x7a4   : > { %v1077_v11 = vmul.f32 %v1739_v9, %v1063_v58 }
 0x7a6   : > { %v1082_v12 = vpack.c.bf16 %v1077_v11, %v1076_v10 }
 0x7a8   : > { %1621 = vmatprep.subr.bf16.mxu1 %v1082_v12 }
 0x7a9   : > { %1622 = vmatpush3.bf16.msra.mxu1 %v1082_v12 }
 0x7aa   : > { %1635 = vmatprep.subr.bf16.mxu1 %v1873_v1 }
 0x7ac   : > { %1624 = vmatmul.mubr.msk.bf16.vlgmr.msra.gmra.mrb[16].mxu1 %vm657_vm2, %v1705_v13 }
 0x7ad   : > { %1639 = vmatprep.mubr.msk.bf16.mxu1 %vm1874_vm0, %v1873_v1 }
 0x87f   : > { %v1625_v18 = vpop.f32.mrb[16].mxu1 }
 0x880   : > { %v1166_v19 = vadd.f32 %v1625_v18, %v1100_v17  ;;  %v1157_v20 = vpop.f32.mrb[17].mxu1 }
 0x881   : > { %v1158_v22 = vadd.f32 %v1157_v20, %v1090_v15  ;;  %v1626_v23 = vpop.f32.mrb[18].mxu1 }
 0x882   : > { %v1174_v24 = vsub.f32 0.0, %v1166_v19  ;;  %v1169_v25 = vadd.f32 %v1626_v23, %v1105_v21  ;;  %v1160_v26 = vpop.f32.mrb[19].mxu1 }
 0x883   : > { %v1172_v27 = vsub.f32 0.0, %v1158_v22  ;;  %v1161_v28 = vadd.f32 %v1160_v26, %v1095_v16 }
 0x884   : > { %v1180_v29 = vmul.f32 1.442695, %v1174_v24  ;;  %v1175_v30 = vsub.f32 0.0, %v1169_v25 }
 0x885   : > { %v1176_v2 = vmul.f32 1.442695, %v1172_v27  ;;  %v1173_v31 = vsub.f32 0.0, %v1161_v28 }
 0x886   : > { %1740 = vpow2.f32 %v1180_v29  ;;  %v1182_v32 = vmul.f32 1.442695, %v1175_v30  ;;  %v1315_v29 = vld [vmem:[%s2298_s14] sm:$0x1]  ;;  %v1324_v30 = vlaneseq }
 0x887   : > { %1742 = vpow2.f32 %v1176_v2  ;;  %v1178_v33 = vmul.f32 1.442695, %v1173_v31 }
 0x888   : > { %1744 = vpow2.f32 %v1182_v32  ;;  %v1325_v2 = vshrl.u32 %v1324_v30, 7  ;;  %v1322_v32 = vpop.permute.xlu0 %1321 }
 0x889   : > { %1746 = vpow2.f32 %v1178_v33 }
 0x88a   : > { %v1326_v31 = vsub.s32 0, %v1325_v2 }
 0x88c   : > { %v1327_v33 = vrot.slane %v1322_v32, %v1326_v31 }
 0x890   : > { %v1741_v34 = vpop.eup %1740 }
 0x891   : > { %v1743_v35 = vpop.eup %1742  ;;  %v1186_v36 = vadd.f32 1.0, %v1741_v34 }
 0x892   : > { %v1745_v3 = vpop.eup %1744  ;;  %v1184_v37 = vadd.f32 1.0, %v1743_v35 }
 0x893   : > { %v1747_v4 = vpop.eup %1746  ;;  %1748 = vrcp.f32 %v1186_v36  ;;  %v1187_v38 = vadd.f32 1.0, %v1745_v3 }
 0x894   : > { %1750 = vrcp.f32 %v1184_v37  ;;  %v1185_v39 = vadd.f32 1.0, %v1747_v4 }
 0x895   : > { %1752 = vrcp.f32 %v1187_v38 }
 0x896   : > { %1754 = vrcp.f32 %v1185_v39 }
 0x89d   : > { %v1749_v5 = vpop.eup %1748 }
 0x89e   : > { %v1751_v40 = vpop.eup %1750  ;;  %v1194_v43 = vmul.f32 %v1749_v5, %v1166_v19 }
 0x89f   : > { %v1753_v41 = vpop.eup %1752  ;;  %v1192_v45 = vmul.f32 %v1751_v40, %v1158_v22 }
 0x8a0   : > { %v1755_v42 = vpop.eup %1754  ;;  %v1195_v44 = vmul.f32 %v1753_v41, %v1169_v25 }
 0x8a1   : > { %v1193_v46 = vmul.f32 %v1755_v42, %v1161_v28 }
 0x8a2   : > { %v1201_v47 = vpack.c.bf16 %v1195_v44, %v1194_v43 }
 0x8a3   : > { %v1200_v48 = vpack.c.bf16 %v1193_v46, %v1192_v45 }
 0x8a5   : > { %1627 = vmatprep.subr.bf16.mxu0 %v1200_v48 }
 0x8a6   : > { %1628 = vmatpush3.bf16.msra.mxu0 %v1200_v48 }
 0x8a7   : > { %1629 = vmatprep.subr.bf16.mxu0 %v1201_v47 }
 0x8aa   : > { %1630 = vmatpush3.bf16.msra.mxu0 %v1201_v47 }
 0x8ad   : > { %1632 = vmatmul.mubr.msk.bf16.vlgmr.msra.gmra.mrb[16].mxu0 %vm779_vm3, %v1707_v49 }
 0x980   : > { %v1633_v53 = vpop.f32.mrb[16].mxu0 }
 0x981   : > { %v1285_v54 = vadd.f32 %v1633_v53, %v1219_v52  ;;  %v1276_v55 = vpop.f32.mrb[17].mxu0 }
 0x982   : > { %v1277_v57 = vadd.f32 %v1276_v55, %v1209_v50  ;;  %v1634_v58 = vpop.f32.mrb[18].mxu0 }
 0x983   : > { %v1293_v59 = vsub.f32 0.0, %v1285_v54  ;;  %v1288_v60 = vadd.f32 %v1634_v58, %v1224_v56  ;;  %v1279_v61 = vpop.f32.mrb[19].mxu0 }
 0x984   : > { %v1291_v62 = vsub.f32 0.0, %v1277_v57  ;;  %v1280_v63 = vadd.f32 %v1279_v61, %v1214_v51 }
 0x985   : > { %v1299_v0 = vmul.f32 1.442695, %v1293_v59  ;;  %v1294_v6 = vsub.f32 0.0, %v1288_v60 }
 0x986   : > { %v1295_v7 = vmul.f32 1.442695, %v1291_v62  ;;  %v1292_v8 = vsub.f32 0.0, %v1280_v63 }
 0x987   : > { %1756 = vpow2.f32 %v1299_v0  ;;  %v1301_v9 = vmul.f32 1.442695, %v1294_v6 }
 0x988   : > { %1758 = vpow2.f32 %v1295_v7  ;;  %v1297_v10 = vmul.f32 1.442695, %v1292_v8 }
 0x989   : > { %1760 = vpow2.f32 %v1301_v9 }
 0x98a   : > { %1762 = vpow2.f32 %v1297_v10 }
 0x991   : > { %v1757_v11 = vpop.eup %1756 }
 0x992   : > { %v1759_v12 = vpop.eup %1758  ;;  %v1305_v13 = vadd.f32 1.0, %v1757_v11 }
 0x993   : > { %v1761_v14 = vpop.eup %1760  ;;  %v1303_v15 = vadd.f32 1.0, %v1759_v12 }
 0x994   : > { %v1763_v16 = vpop.eup %1762  ;;  %1764 = vrcp.f32 %v1305_v13  ;;  %v1306_v17 = vadd.f32 1.0, %v1761_v14 }
 0x995   : > { %1766 = vrcp.f32 %v1303_v15  ;;  %v1304_v18 = vadd.f32 1.0, %v1763_v16 }
 0x996   : > { %1768 = vrcp.f32 %v1306_v17 }
 0x997   : > { %1770 = vrcp.f32 %v1304_v18 }
 0x99e   : > { %v1765_v19 = vpop.eup %1764 }
 0x99f   : > { %v1767_v20 = vpop.eup %1766  ;;  %v1313_v23 = vmul.f32 %v1765_v19, %v1285_v54 }
 0x9a0   : > { %v1769_v21 = vpop.eup %1768  ;;  %v1311_v25 = vmul.f32 %v1767_v20, %v1277_v57 }
 0x9a1   : > { %v1771_v22 = vpop.eup %1770  ;;  %v1314_v24 = vmul.f32 %v1769_v21, %v1288_v60 }
 0x9a2   : > { %v1312_v26 = vmul.f32 %v1771_v22, %v1280_v63 }
 0x9a3   : > { %v1317_v27 = vpack.c.bf16 %v1314_v24, %v1313_v23 }
 0x9a4   : > { %v1316_v28 = vpack.c.bf16 %v1312_v26, %v1311_v25 }
 0x9a6   : > { %1636 = vmatpush3.bf16.msra.mxu1 %v1316_v28 }
 0x9a7   : > { %1637 = vmatprep.subr.bf16.mxu1 %v1873_v1 }
 0x9aa   : > { %1638 = vmatpush3.bf16.msra.mxu1 %v1317_v27 }
 0x9ad   : > { %1640 = vmatmul.mubr.msk.bf16.vlgmr.msra.gmra.mrb[20].mxu1 %vm779_vm3, %v1315_v29 }
 0xa80   : > { %v1365_v34 = vpop.f32.mrb[20].mxu1 }
 0xa81   : > { %v1366_v1 = vadd.f32 %v1365_v34, %v1327_v33  ;;  %v1641_v35 = vpop.f32.mrb[21].mxu1 }
 0xa82   : > { %v1368_v36 = vpop.f32.mrb[22].mxu1 }
 0xa83   : > { %v1642_v3 = vpop.f32.mrb[23].mxu1  ;;  %1372 = vst.msk [vmem:[%s553_s25] sm:$0x1] %vm1371_vm4, %v1366_v1 }
 0xa84   : > { %1815 = shalt.err (!%p1812_p3)
}
 0xa85   : > { %s1816_s27 = scalar_lea.hbm %s2241_s29, 16  ;;  %s1820_s30 = scalar_lea.hbm %s2324_s0, 128 }
 0xa86   : > { %p1817_p4 = scmp.ne.s32.totalorder %s2241_s29, %s1816_s27  ;;  %p1821_p2 = scmp.lt.u32.totalorder %s2241_s29, %s2324_s0 }
 0xa87   : > { %p1822_p7 = scmp.lt.u32.totalorder %s1820_s30, %s1816_s27  ;;  %p1824_p6 = scmp.lt.u32.totalorder %s1816_s27, %s2241_s29 }
 0xa88   : > { %p1818_p5 = pnand %p1817_p4, %p2325_p11 }
 0xa89   : > { %p1823_p10 = por %p1822_p7, %p1821_p2 }
 0xa8a   : > { %p1819_p0 = pneg %p1818_p5 }
 0xa8b   : > { %p1825_p12 = por %p1824_p6, %p1823_p10 }
 0xa8d   : > { %p1826_p8 = pnand %p1825_p12, %p1819_p0 }
 0xa8f   : > { %1829 = shalt.err (!%p1826_p8)
}
 0xa90   : > { %1645 = dma.vmem_to_hbm [thread:$0]  (%p2325_p11), %s2243_s18, 16, %s2241_s29, %s1374_s15  }
 0xa91 PF: > { %s2326_s21 = sld [smem:[#allocation9_spill]]  ;;  %p1656_p9 = scmp.ge.s32.totalorder %s1868_s26, 2 }
 0xa92   : > { %p2327_p13 = scmp.ne.s32.totalorder %s2320_s20, 0 }
 0xa94   : > { %p1652_p1 = pnand %p1656_p9, %p2327_p13 }
 0xa97   : > { %s1398_s19 = sand.u32 1, %s2326_s21  }
 0xa98   : > { %s1399_s16 = scalar_lea.sflag [#allocation5], %s1398_s19 }
 0xa99   : > { %1851 = dma.done.wait (!%p1652_p1), %s1399_s16, 16  }
 0xa9a   : > { %1853 = vsyncadd (!%p1652_p1), %s1399_s16, 4294967280  ;;  %s2328_s26 = sld [smem:[#allocation11_spill]]  ;;  %s2329_s27 = sld [smem:[#allocation10_spill]] }
 0xa9b   : > { %s2330_s25 = sld [smem:[#allocation12_spill]]  ;;  %s2331_s23 = smov %s1860_s24 }
 0xaa0   : > { %p31_p3 = scmp.ge.s32.totalorder %s2328_s26, 10   ;;  %s2332_s24 = smov %s2329_s27 }
 0xaa2   :  { %33 = sbr.rel (!%p31_p3) target bundleno = 8 (0x8), region = 132 }
 0xaa9   :  { %1403 = vsyncpa [#allocation4], 1 }
 0xaaa   :  { %1405 = vsyncpa [#allocation4 + $0x1], 1 }
 0xaab   :  { %1406 = vsyncpa [#allocation5], 1 }
 0xaac   :  { %1408 = vsyncpa [#allocation5 + $0x1], 1 }

</bundles_post_ra>
